<compile_context>
chip_gen: v6e
topology: v6e:2x2x1
jax: 0.10.0
libtpu: 0.0.40
codegen_flags: <defaults>
</compile_context>

<pallas_src>
import functools

import jax
import jax.numpy as jnp
from jax.experimental import pallas as pl
from jax.experimental.pallas import tpu as pltpu


# ----------------------------- Pallas kernels ------------------------------

def _attn_block_kernel(q_ref, kv_ref, bias_ref,
                       wq_ref, wk_ref, wv_ref, wo_ref, bo_ref,
                       g_ref, b_ref, o_ref, *, heads, scale, eps):
    """Fused: head-proj -> scores -> mask -> softmax -> AV -> fc_out -> add&LN.

    q_ref:  (1, Tq, E) f32   kv_ref: (1, Tk, E) f32   bias_ref: (1, Tq, Tk) f32
    wq/wk/wv_ref: (E, E) bf16 block-diagonal (per-head proj, x @ W form)
    wo_ref: (E, E) bf16 pre-transposed (x @ W form), bo_ref: (1, E) f32
    g_ref/b_ref: (1, E) f32 LayerNorm affine.  o_ref: (1, Tq, E) f32
    """
    q_in = q_ref[0]                      # (Tq, E) f32 — also the residual
    kv_in = kv_ref[0]                    # (Tk, E) f32
    bias = bias_ref[0]                   # (Tq, Tk) f32 additive mask

    qb = q_in.astype(jnp.bfloat16)
    kvb = kv_in.astype(jnp.bfloat16)
    # Per-head projections as one block-diagonal matmul over E (lane-dense).
    qh = jnp.dot(qb, wq_ref[...], preferred_element_type=jnp.float32) * scale
    kh = jnp.dot(kvb, wk_ref[...], preferred_element_type=jnp.float32)
    vh = jnp.dot(kvb, wv_ref[...], preferred_element_type=jnp.float32)

    d = qh.shape[-1] // heads
    ctx = []
    for h in range(heads):               # static unroll over heads
        sl = slice(h * d, (h + 1) * d)
        qs = qh[:, sl].astype(jnp.bfloat16)
        ks = kh[:, sl].astype(jnp.bfloat16)
        # energy = q @ k^T  (contraction on d, no explicit transpose)
        e = jax.lax.dot_general(qs, ks, (((1,), (1,)), ((), ())),
                                preferred_element_type=jnp.float32)
        e = e + bias                     # additive mask (-1e20 where masked)
        m = jnp.max(e, axis=-1, keepdims=True)
        p = jnp.exp(e - m)
        inv = pl.reciprocal(jnp.sum(p, axis=-1, keepdims=True), approx=True)
        a = (p * inv).astype(jnp.bfloat16)
        ctx.append(jnp.dot(a, vh[:, sl].astype(jnp.bfloat16),
                           preferred_element_type=jnp.float32))
    concat = jnp.concatenate(ctx, axis=-1)                  # (Tq, E)

    attn_out = jnp.dot(concat.astype(jnp.bfloat16), wo_ref[...],
                       preferred_element_type=jnp.float32) + bo_ref[...]

    x = attn_out + q_in                  # residual add (f32)
    mean = jnp.mean(x, axis=-1, keepdims=True)
    var = jnp.mean(jnp.square(x - mean), axis=-1, keepdims=True)
    xn = (x - mean) * jax.lax.rsqrt(var + eps)
    o_ref[0] = xn * g_ref[...] + b_ref[...]


def _ffn_block_kernel(x_ref, w1_ref, b1_ref, w2_ref, b2_ref,
                      g_ref, be_ref, o_ref, *, eps):
    """Fused: Linear -> ReLU -> Linear -> residual add -> LayerNorm."""
    x = x_ref[0]                                             # (T, E) f32
    h = jnp.dot(x.astype(jnp.bfloat16), w1_ref[...],
                preferred_element_type=jnp.float32) + b1_ref[...]
    h = jnp.maximum(h, 0.0)
    ff = jnp.dot(h.astype(jnp.bfloat16), w2_ref[...],
                 preferred_element_type=jnp.float32) + b2_ref[...]
    y = ff + x
    mean = jnp.mean(y, axis=-1, keepdims=True)
    var = jnp.mean(jnp.square(y - mean), axis=-1, keepdims=True)
    yn = (y - mean) * jax.lax.rsqrt(var + eps)
    o_ref[0] = yn * g_ref[...] + be_ref[...]


def _out_proj_kernel(x_ref, w_ref, b_ref, o_ref):
    """Final vocab projection into a lane-padded (multiple-of-128) output."""
    o_ref[...] = (jnp.dot(x_ref[...].astype(jnp.bfloat16), w_ref[...],
                          preferred_element_type=jnp.float32) + b_ref[...])


# ------------------------------ wrappers ------------------------------------

def attention_block(q_in, kv_in, bias, ap, gamma, beta, *, eps=1e-5):
    """q_in: (N, Tq, E), kv_in: (N, Tk, E), bias: (N, Tq, Tk).  Returns
    LayerNorm(fc_out(attention) + q_in) as (N, Tq, E)."""
    N, Tq, E = q_in.shape
    Tk = kv_in.shape[1]
    H = ap["heads"]
    scale = 1.0 / float(E) ** 0.5        # matches reference: 1/sqrt(embed_size)
    kernel = functools.partial(_attn_block_kernel, heads=H, scale=scale, eps=eps)
    return pl.pallas_call(
        kernel,
        out_shape=jax.ShapeDtypeStruct((N, Tq, E), jnp.float32),
        grid=(N,),
        in_specs=[
            pl.BlockSpec((1, Tq, E), lambda n: (n, 0, 0)),
            pl.BlockSpec((1, Tk, E), lambda n: (n, 0, 0)),
            pl.BlockSpec((1, Tq, Tk), lambda n: (n, 0, 0)),
            pl.BlockSpec((E, E), lambda n: (0, 0)),
            pl.BlockSpec((E, E), lambda n: (0, 0)),
            pl.BlockSpec((E, E), lambda n: (0, 0)),
            pl.BlockSpec((E, E), lambda n: (0, 0)),
            pl.BlockSpec((1, E), lambda n: (0, 0)),
            pl.BlockSpec((1, E), lambda n: (0, 0)),
            pl.BlockSpec((1, E), lambda n: (0, 0)),
        ],
        out_specs=pl.BlockSpec((1, Tq, E), lambda n: (n, 0, 0)),
        compiler_params=pltpu.CompilerParams(dimension_semantics=("parallel",)),
    )(q_in, kv_in, bias, ap["wq_bd"], ap["wk_bd"], ap["wv_bd"],
      ap["wo_t"], ap["bo"], gamma, beta)


def ffn_block(x, w1t, b1, w2t, b2, gamma, beta, *, eps=1e-5):
    """x: (N, T, E).  Returns LayerNorm(FFN(x) + x)."""
    N, T, E = x.shape
    Hd = w1t.shape[1]
    return pl.pallas_call(
        functools.partial(_ffn_block_kernel, eps=eps),
        out_shape=jax.ShapeDtypeStruct((N, T, E), jnp.float32),
        grid=(N,),
        in_specs=[
            pl.BlockSpec((1, T, E), lambda n: (n, 0, 0)),
            pl.BlockSpec((E, Hd), lambda n: (0, 0)),
            pl.BlockSpec((1, Hd), lambda n: (0, 0)),
            pl.BlockSpec((Hd, E), lambda n: (0, 0)),
            pl.BlockSpec((1, E), lambda n: (0, 0)),
            pl.BlockSpec((1, E), lambda n: (0, 0)),
            pl.BlockSpec((1, E), lambda n: (0, 0)),
        ],
        out_specs=pl.BlockSpec((1, T, E), lambda n: (n, 0, 0)),
        compiler_params=pltpu.CompilerParams(dimension_semantics=("parallel",)),
    )(x, w1t, b1, w2t, b2, gamma, beta)


def out_projection(x, w_pad_t, b_pad, vocab):
    """x: (N, T, E) -> logits (N, T, vocab); kernel output is lane-padded."""
    N, T, E = x.shape
    M = N * T
    Vp = w_pad_t.shape[1]
    x2 = x.reshape(M, E)
    out = pl.pallas_call(
        _out_proj_kernel,
        out_shape=jax.ShapeDtypeStruct((M, Vp), jnp.float32),
        grid=(1,),
        in_specs=[
            pl.BlockSpec((M, E), lambda i: (0, 0)),
            pl.BlockSpec((E, Vp), lambda i: (0, 0)),
            pl.BlockSpec((1, Vp), lambda i: (0, 0)),
        ],
        out_specs=pl.BlockSpec((M, Vp), lambda i: (0, 0)),
    )(x2, w_pad_t, b_pad)
    return out[:, :vocab].reshape(N, T, vocab)


# --------------------------- Decoder forward ---------------------------------

def decoder_forward(params, tokens, enc_out, src_mask, trg_mask):
    N, T = tokens.shape
    S = enc_out.shape[1]

    positions = jnp.arange(T)
    # embedding lookups (gathers) kept in plain JAX glue
    x = params["word_emb"][tokens] + params["pos_emb"][positions][None, :, :]
    # dropout layers are identity in eval mode

    # masks -> additive biases, computed once per forward pass
    trg_bias = jnp.where(trg_mask[:, 0] == 0,
                         jnp.float32(-1e20), jnp.float32(0.0))        # (N, T, T)
    src_bias = jnp.where(jnp.broadcast_to(src_mask[:, 0], (N, T, S)) == 0,
                         jnp.float32(-1e20), jnp.float32(0.0))        # (N, T, S)

    for lp in params["layers"]:
        # DecoderBlock: masked self-attention + add & norm (fused)
        query = attention_block(x, x, trg_bias, lp["self_attn"],
                                lp["norm_g"], lp["norm_b"])
        # TransformerBlock: cross-attention (K=V=enc_out) + add & norm (fused)
        xb = attention_block(query, enc_out, src_bias, lp["cross_attn"],
                             lp["norm1_g"], lp["norm1_b"])
        # feed-forward + add & norm (fused)
        x = ffn_block(xb, lp["ff_w1t"], lp["ff_b1"], lp["ff_w2t"], lp["ff_b2"],
                      lp["norm2_g"], lp["norm2_b"])

    return out_projection(x, params["fc_wt_pad"], params["fc_b_pad"],
                          params["vocab"])


# ------------------------- deterministic parameters --------------------------

def init_params(key, *, vocab, embed_size, num_layers, heads,
                forward_expansion, max_length):
    d = embed_size // heads
    hidden = forward_expansion * embed_size
    keys = iter(jax.random.split(key, 128))

    def nrm(shape, scale=0.02):
        return (scale * jax.random.normal(next(keys), shape)).astype(jnp.float32)

    def block_diag_T(w):
        # w: (d, d) PyTorch-style (out, in).  Build (E, E) so that
        # (x @ bd)[:, h*d:(h+1)*d] == x[:, h*d:(h+1)*d] @ w.T for every head.
        bd = jnp.zeros((embed_size, embed_size), jnp.float32)
        for h in range(heads):
            bd = bd.at[h * d:(h + 1) * d, h * d:(h + 1) * d].set(w.T)
        return bd.astype(jnp.bfloat16)

    def attn_params():
        wq, wk, wv = nrm((d, d)), nrm((d, d)), nrm((d, d))
        wo = nrm((embed_size, embed_size))
        return {
            "heads": heads,
            "wq_bd": block_diag_T(wq),
            "wk_bd": block_diag_T(wk),
            "wv_bd": block_diag_T(wv),
            "wo_t": wo.T.astype(jnp.bfloat16),
            "bo": jnp.zeros((1, embed_size), jnp.float32),
        }

    vpad = ((vocab + 127) // 128) * 128          # lane-dense vocab padding
    fc_w = nrm((vocab, embed_size))
    fc_b = jnp.zeros((vocab,), jnp.float32)
    fc_wt_pad = jnp.zeros((embed_size, vpad), jnp.bfloat16)
    fc_wt_pad = fc_wt_pad.at[:, :vocab].set(fc_w.T.astype(jnp.bfloat16))
    fc_b_pad = jnp.zeros((1, vpad), jnp.float32).at[:, :vocab].set(fc_b)

    params = {
        "embed_size": embed_size,
        "vocab": vocab,
        "word_emb": nrm((vocab, embed_size)),
        "pos_emb": nrm((max_length, embed_size)),
        "fc_wt_pad": fc_wt_pad,
        "fc_b_pad": fc_b_pad,
        "layers": [],
    }
    for _ in range(num_layers):
        w1 = nrm((hidden, embed_size))
        w2 = nrm((embed_size, hidden))
        params["layers"].append({
            "self_attn": attn_params(),
            "cross_attn": attn_params(),
            "norm_g": jnp.ones((1, embed_size), jnp.float32),
            "norm_b": jnp.zeros((1, embed_size), jnp.float32),
            "norm1_g": jnp.ones((1, embed_size), jnp.float32),
            "norm1_b": jnp.zeros((1, embed_size), jnp.float32),
            "norm2_g": jnp.ones((1, embed_size), jnp.float32),
            "norm2_b": jnp.zeros((1, embed_size), jnp.float32),
            "ff_w1t": w1.T.astype(jnp.bfloat16),
            "ff_b1": jnp.zeros((1, hidden), jnp.float32),
            "ff_w2t": w2.T.astype(jnp.bfloat16),
            "ff_b2": jnp.zeros((1, embed_size), jnp.float32),
        })
    return params


# ----------------------------------- main ------------------------------------

if __name__ == "__main__":
    N, T, S = 2, 8, 8                # batch, target seq, source (encoder) seq
    embed_size, heads = 32, 4        # head_dim = 8
    num_layers, forward_expansion = 2, 2
    trg_vocab_size, max_length = 50, 16

    key = jax.random.PRNGKey(0)
    k_par, k_tok, k_enc = jax.random.split(key, 3)

    params = init_params(k_par, vocab=trg_vocab_size, embed_size=embed_size,
                         num_layers=num_layers, heads=heads,
                         forward_expansion=forward_expansion,
                         max_length=max_length)

    tokens = jax.random.randint(k_tok, (N, T), 0, trg_vocab_size)
    enc_out = jax.random.normal(k_enc, (N, S, embed_size), jnp.float32)
    # causal target mask (N, 1, T, T) and all-ones source mask (N, 1, 1, S)
    trg_mask = jnp.broadcast_to(jnp.tril(jnp.ones((T, T), jnp.float32)),
                                (N, 1, T, T))
    src_mask = jnp.ones((N, 1, 1, S), jnp.float32)

    fwd = jax.jit(functools.partial(decoder_forward, params))
    out = fwd(tokens, enc_out, src_mask, trg_mask)
    out = jax.block_until_ready(out)
    assert out.shape == (N, T, trg_vocab_size)
    assert bool(jnp.all(jnp.isfinite(out)))
    print("KERNEL_OK")
</pallas_src>

<mosaic_0001>
module attributes {stable_mosaic.version = 11 : i64} {
  func.func @_out_proj_kernel(%arg0: i32, %arg1: memref<16x32xf32, #tpu.memory_space<vmem>>, %arg2: memref<32x128xbf16, #tpu.memory_space<vmem>>, %arg3: memref<1x128xf32, #tpu.memory_space<vmem>>, %arg4: memref<16x128xf32, #tpu.memory_space<vmem>>) attributes {dimension_semantics = [#tpu.dimension_semantics<arbitrary>], iteration_bounds = array<i64: 1>, scalar_prefetch = 0 : i64, scratch_operands = 0 : i64, tpu.core_type = #tpu.core_type<tc>, window_params = [{pipeline_mode = #tpu.pipeline_mode<synchronous>, transform_indices = @transform_0, window_bounds = array<i64: 16, 32>}, {pipeline_mode = #tpu.pipeline_mode<synchronous>, transform_indices = @transform_1, window_bounds = array<i64: 32, 128>}, {pipeline_mode = #tpu.pipeline_mode<synchronous>, transform_indices = @transform_2, window_bounds = array<i64: 1, 128>}, {pipeline_mode = #tpu.pipeline_mode<synchronous>, transform_indices = @transform_3, window_bounds = array<i64: 16, 128>}]} {
    %c0 = arith.constant 0 : index
    %c0_0 = arith.constant 0 : index
    %0 = vector.load %arg1[%c0, %c0_0] : memref<16x32xf32, #tpu.memory_space<vmem>>, vector<16x32xf32>
    %1 = arith.truncf %0 : vector<16x32xf32> to vector<16x32xbf16>
    %c0_1 = arith.constant 0 : index
    %c0_2 = arith.constant 0 : index
    %2 = vector.load %arg2[%c0_1, %c0_2] : memref<32x128xbf16, #tpu.memory_space<vmem>>, vector<32x128xbf16>
    %cst = arith.constant dense<0.000000e+00> : vector<16x128xf32>
    %3 = tpu.matmul %1, %2, %cst {dimension_numbers = #tpu.dot_dimension_numbers<[1], [0], [0], [1], [0, 0, 1, 1], [], []>} : vector<16x32xbf16>, vector<32x128xbf16>, vector<16x128xf32> -> vector<16x128xf32>
    %c0_3 = arith.constant 0 : index
    %c0_4 = arith.constant 0 : index
    %4 = vector.load %arg3[%c0_3, %c0_4] : memref<1x128xf32, #tpu.memory_space<vmem>>, vector<1x128xf32>
    %5 = vector.broadcast %4 : vector<1x128xf32> to vector<16x128xf32>
    %6 = arith.addf %3, %5 : vector<16x128xf32>
    %c0_5 = arith.constant 0 : index
    %c0_6 = arith.constant 0 : index
    %7 = vector.load %arg4[%c0_5, %c0_6] : memref<16x128xf32, #tpu.memory_space<vmem>>, vector<16x128xf32>
    tpu.vector_store %arg4[%c0_5, %c0_6], %6 {strides = array<i32>} : memref<16x128xf32, #tpu.memory_space<vmem>>, vector<16x128xf32>,
    return
  }
  func.func @transform_0(%arg0: i32) -> (i32, i32) {
    %c0_i32 = arith.constant 0 : i32
    %c0_i32_0 = arith.constant 0 : i32
    %c0_i32_1 = arith.constant 0 : i32
    return %c0_i32, %c0_i32_0 : i32, i32
  }
  func.func @transform_1(%arg0: i32) -> (i32, i32) {
    %c0_i32 = arith.constant 0 : i32
    %c0_i32_0 = arith.constant 0 : i32
    %c0_i32_1 = arith.constant 0 : i32
    return %c0_i32, %c0_i32_0 : i32, i32
  }
  func.func @transform_2(%arg0: i32) -> (i32, i32) {
    %c0_i32 = arith.constant 0 : i32
    %c0_i32_0 = arith.constant 0 : i32
    %c0_i32_1 = arith.constant 0 : i32
    return %c0_i32, %c0_i32_0 : i32, i32
  }
  func.func @transform_3(%arg0: i32) -> (i32, i32) {
    %c0_i32 = arith.constant 0 : i32
    %c0_i32_0 = arith.constant 0 : i32
    %c0_i32_1 = arith.constant 0 : i32
    return %c0_i32, %c0_i32_0 : i32, i32
  }
}

module attributes {stable_mosaic.version = 11 : i64} {
  func.func @_ffn_block_kernel(%arg0: i32, %arg1: memref<1x8x32xf32, #tpu.memory_space<vmem>>, %arg2: memref<32x64xbf16, #tpu.memory_space<vmem>>, %arg3: memref<1x64xf32, #tpu.memory_space<vmem>>, %arg4: memref<64x32xbf16, #tpu.memory_space<vmem>>, %arg5: memref<1x32xf32, #tpu.memory_space<vmem>>, %arg6: memref<1x32xf32, #tpu.memory_space<vmem>>, %arg7: memref<1x32xf32, #tpu.memory_space<vmem>>, %arg8: memref<1x8x32xf32, #tpu.memory_space<vmem>>) attributes {dimension_semantics = [#tpu.dimension_semantics<parallel>], iteration_bounds = array<i64: 2>, scalar_prefetch = 0 : i64, scratch_operands = 0 : i64, tpu.core_type = #tpu.core_type<tc>, window_params = [{transform_indices = @transform_0, window_bounds = array<i64: 1, 8, 32>}, {pipeline_mode = #tpu.pipeline_mode<synchronous>, transform_indices = @transform_1, window_bounds = array<i64: 32, 64>}, {pipeline_mode = #tpu.pipeline_mode<synchronous>, transform_indices = @transform_2, window_bounds = array<i64: 1, 64>}, {pipeline_mode = #tpu.pipeline_mode<synchronous>, transform_indices = @transform_3, window_bounds = array<i64: 64, 32>}, {pipeline_mode = #tpu.pipeline_mode<synchronous>, transform_indices = @transform_4, window_bounds = array<i64: 1, 32>}, {pipeline_mode = #tpu.pipeline_mode<synchronous>, transform_indices = @transform_5, window_bounds = array<i64: 1, 32>}, {pipeline_mode = #tpu.pipeline_mode<synchronous>, transform_indices = @transform_6, window_bounds = array<i64: 1, 32>}, {transform_indices = @transform_7, window_bounds = array<i64: 1, 8, 32>}]} {
    %c0 = arith.constant 0 : index
    %c0_0 = arith.constant 0 : index
    %c0_1 = arith.constant 0 : index
    %0 = vector.load %arg1[%c0, %c0_0, %c0_1] : memref<1x8x32xf32, #tpu.memory_space<vmem>>, vector<1x8x32xf32>
    %1 = vector.shape_cast %0 : vector<1x8x32xf32> to vector<8x32xf32>
    %2 = arith.truncf %1 : vector<8x32xf32> to vector<8x32xbf16>
    %c0_2 = arith.constant 0 : index
    %c0_3 = arith.constant 0 : index
    %3 = vector.load %arg2[%c0_2, %c0_3] : memref<32x64xbf16, #tpu.memory_space<vmem>>, vector<32x64xbf16>
    %cst = arith.constant dense<0.000000e+00> : vector<8x64xf32>
    %4 = tpu.matmul %2, %3, %cst {dimension_numbers = #tpu.dot_dimension_numbers<[1], [0], [0], [1], [0, 0, 1, 1], [], []>} : vector<8x32xbf16>, vector<32x64xbf16>, vector<8x64xf32> -> vector<8x64xf32>
    %c0_4 = arith.constant 0 : index
    %c0_5 = arith.constant 0 : index
    %5 = vector.load %arg3[%c0_4, %c0_5] : memref<1x64xf32, #tpu.memory_space<vmem>>, vector<1x64xf32>
    %6 = vector.broadcast %5 : vector<1x64xf32> to vector<8x64xf32>
    %7 = arith.addf %4, %6 : vector<8x64xf32>
    %cst_6 = arith.constant 0.000000e+00 : f32
    %8 = vector.broadcast %cst_6 : f32 to vector<8x64xf32>
    %9 = arith.maximumf %7, %8 : vector<8x64xf32>
    %10 = arith.truncf %9 : vector<8x64xf32> to vector<8x64xbf16>
    %c0_7 = arith.constant 0 : index
    %c0_8 = arith.constant 0 : index
    %11 = vector.load %arg4[%c0_7, %c0_8] : memref<64x32xbf16, #tpu.memory_space<vmem>>, vector<64x32xbf16>
    %cst_9 = arith.constant dense<0.000000e+00> : vector<8x32xf32>
    %12 = tpu.matmul %10, %11, %cst_9 {dimension_numbers = #tpu.dot_dimension_numbers<[1], [0], [0], [1], [0, 0, 1, 1], [], []>} : vector<8x64xbf16>, vector<64x32xbf16>, vector<8x32xf32> -> vector<8x32xf32>
    %c0_10 = arith.constant 0 : index
    %c0_11 = arith.constant 0 : index
    %13 = vector.load %arg5[%c0_10, %c0_11] : memref<1x32xf32, #tpu.memory_space<vmem>>, vector<1x32xf32>
    %14 = vector.broadcast %13 : vector<1x32xf32> to vector<8x32xf32>
    %15 = arith.addf %12, %14 : vector<8x32xf32>
    %16 = arith.addf %15, %1 : vector<8x32xf32>
    %cst_12 = arith.constant dense<0.000000e+00> : vector<8xf32>
    %17 = vector.multi_reduction <add>, %16, %cst_12 [1] : vector<8x32xf32> to vector<8xf32>
    %18 = vector.shape_cast %17 : vector<8xf32> to vector<8x1xf32>
    %cst_13 = arith.constant 3.200000e+01 : f32
    %19 = vector.broadcast %cst_13 : f32 to vector<8x1xf32>
    %20 = arith.divf %18, %19 : vector<8x1xf32>
    %21 = vector.broadcast %20 : vector<8x1xf32> to vector<8x32xf32>
    %22 = arith.subf %16, %21 : vector<8x32xf32>
    %23 = arith.mulf %22, %22 : vector<8x32xf32>
    %cst_14 = arith.constant dense<0.000000e+00> : vector<8xf32>
    %24 = vector.multi_reduction <add>, %23, %cst_14 [1] : vector<8x32xf32> to vector<8xf32>
    %25 = vector.shape_cast %24 : vector<8xf32> to vector<8x1xf32>
    %cst_15 = arith.constant 3.200000e+01 : f32
    %26 = vector.broadcast %cst_15 : f32 to vector<8x1xf32>
    %27 = arith.divf %25, %26 : vector<8x1xf32>
    %28 = vector.broadcast %20 : vector<8x1xf32> to vector<8x32xf32>
    %29 = arith.subf %16, %28 : vector<8x32xf32>
    %cst_16 = arith.constant 9.99999974E-6 : f32
    %30 = vector.broadcast %cst_16 : f32 to vector<8x1xf32>
    %31 = arith.addf %27, %30 : vector<8x1xf32>
    %32 = math.rsqrt %31 : vector<8x1xf32>
    %33 = vector.broadcast %32 : vector<8x1xf32> to vector<8x32xf32>
    %34 = arith.mulf %29, %33 : vector<8x32xf32>
    %c0_17 = arith.constant 0 : index
    %c0_18 = arith.constant 0 : index
    %35 = vector.load %arg6[%c0_17, %c0_18] : memref<1x32xf32, #tpu.memory_space<vmem>>, vector<1x32xf32>
    %36 = vector.broadcast %35 : vector<1x32xf32> to vector<8x32xf32>
    %37 = arith.mulf %34, %36 : vector<8x32xf32>
    %c0_19 = arith.constant 0 : index
    %c0_20 = arith.constant 0 : index
    %38 = vector.load %arg7[%c0_19, %c0_20] : memref<1x32xf32, #tpu.memory_space<vmem>>, vector<1x32xf32>
    %39 = vector.broadcast %38 : vector<1x32xf32> to vector<8x32xf32>
    %40 = arith.addf %37, %39 : vector<8x32xf32>
    %c0_21 = arith.constant 0 : index
    %c0_22 = arith.constant 0 : index
    %c0_23 = arith.constant 0 : index
    %41 = vector.load %arg8[%c0_21, %c0_22, %c0_23] : memref<1x8x32xf32, #tpu.memory_space<vmem>>, vector<1x8x32xf32>
    %42 = vector.shape_cast %41 : vector<1x8x32xf32> to vector<8x32xf32>
    %43 = vector.shape_cast %40 : vector<8x32xf32> to vector<1x8x32xf32>
    tpu.vector_store %arg8[%c0_21, %c0_22, %c0_23], %43 {strides = array<i32>} : memref<1x8x32xf32, #tpu.memory_space<vmem>>, vector<1x8x32xf32>,
    return
  }
  func.func @transform_0(%arg0: i32) -> (i32, i32, i32) {
    %c0_i32 = arith.constant 0 : i32
    %c0_i32_0 = arith.constant 0 : i32
    %c0_i32_1 = arith.constant 0 : i32
    return %arg0, %c0_i32, %c0_i32_0 : i32, i32, i32
  }
  func.func @transform_1(%arg0: i32) -> (i32, i32) {
    %c0_i32 = arith.constant 0 : i32
    %c0_i32_0 = arith.constant 0 : i32
    %c0_i32_1 = arith.constant 0 : i32
    return %c0_i32, %c0_i32_0 : i32, i32
  }
  func.func @transform_2(%arg0: i32) -> (i32, i32) {
    %c0_i32 = arith.constant 0 : i32
    %c0_i32_0 = arith.constant 0 : i32
    %c0_i32_1 = arith.constant 0 : i32
    return %c0_i32, %c0_i32_0 : i32, i32
  }
  func.func @transform_3(%arg0: i32) -> (i32, i32) {
    %c0_i32 = arith.constant 0 : i32
    %c0_i32_0 = arith.constant 0 : i32
    %c0_i32_1 = arith.constant 0 : i32
    return %c0_i32, %c0_i32_0 : i32, i32
  }
  func.func @transform_4(%arg0: i32) -> (i32, i32) {
    %c0_i32 = arith.constant 0 : i32
    %c0_i32_0 = arith.constant 0 : i32
    %c0_i32_1 = arith.constant 0 : i32
    return %c0_i32, %c0_i32_0 : i32, i32
  }
  func.func @transform_5(%arg0: i32) -> (i32, i32) {
    %c0_i32 = arith.constant 0 : i32
    %c0_i32_0 = arith.constant 0 : i32
    %c0_i32_1 = arith.constant 0 : i32
    return %c0_i32, %c0_i32_0 : i32, i32
  }
  func.func @transform_6(%arg0: i32) -> (i32, i32) {
    %c0_i32 = arith.constant 0 : i32
    %c0_i32_0 = arith.constant 0 : i32
    %c0_i32_1 = arith.constant 0 : i32
    return %c0_i32, %c0_i32_0 : i32, i32
  }
  func.func @transform_7(%arg0: i32) -> (i32, i32, i32) {
    %c0_i32 = arith.constant 0 : i32
    %c0_i32_0 = arith.constant 0 : i32
    %c0_i32_1 = arith.constant 0 : i32
    return %arg0, %c0_i32, %c0_i32_0 : i32, i32, i32
  }
}

module attributes {stable_mosaic.version = 11 : i64} {
  func.func @_attn_block_kernel(%arg0: i32, %arg1: memref<1x8x32xf32, #tpu.memory_space<vmem>>, %arg2: memref<1x8x32xf32, #tpu.memory_space<vmem>>, %arg3: memref<1x8x8xf32, #tpu.memory_space<vmem>>, %arg4: memref<32x32xbf16, #tpu.memory_space<vmem>>, %arg5: memref<32x32xbf16, #tpu.memory_space<vmem>>, %arg6: memref<32x32xbf16, #tpu.memory_space<vmem>>, %arg7: memref<32x32xbf16, #tpu.memory_space<vmem>>, %arg8: memref<1x32xf32, #tpu.memory_space<vmem>>, %arg9: memref<1x32xf32, #tpu.memory_space<vmem>>, %arg10: memref<1x32xf32, #tpu.memory_space<vmem>>, %arg11: memref<1x8x32xf32, #tpu.memory_space<vmem>>) attributes {dimension_semantics = [#tpu.dimension_semantics<parallel>], iteration_bounds = array<i64: 2>, scalar_prefetch = 0 : i64, scratch_operands = 0 : i64, tpu.core_type = #tpu.core_type<tc>, window_params = [{transform_indices = @transform_0, window_bounds = array<i64: 1, 8, 32>}, {transform_indices = @transform_1, window_bounds = array<i64: 1, 8, 32>}, {transform_indices = @transform_2, window_bounds = array<i64: 1, 8, 8>}, {pipeline_mode = #tpu.pipeline_mode<synchronous>, transform_indices = @transform_3, window_bounds = array<i64: 32, 32>}, {pipeline_mode = #tpu.pipeline_mode<synchronous>, transform_indices = @transform_4, window_bounds = array<i64: 32, 32>}, {pipeline_mode = #tpu.pipeline_mode<synchronous>, transform_indices = @transform_5, window_bounds = array<i64: 32, 32>}, {pipeline_mode = #tpu.pipeline_mode<synchronous>, transform_indices = @transform_6, window_bounds = array<i64: 32, 32>}, {pipeline_mode = #tpu.pipeline_mode<synchronous>, transform_indices = @transform_7, window_bounds = array<i64: 1, 32>}, {pipeline_mode = #tpu.pipeline_mode<synchronous>, transform_indices = @transform_8, window_bounds = array<i64: 1, 32>}, {pipeline_mode = #tpu.pipeline_mode<synchronous>, transform_indices = @transform_9, window_bounds = array<i64: 1, 32>}, {transform_indices = @transform_10, window_bounds = array<i64: 1, 8, 32>}]} {
    %c0 = arith.constant 0 : index
    %c0_0 = arith.constant 0 : index
    %c0_1 = arith.constant 0 : index
    %0 = vector.load %arg1[%c0, %c0_0, %c0_1] : memref<1x8x32xf32, #tpu.memory_space<vmem>>, vector<1x8x32xf32>
    %1 = vector.shape_cast %0 : vector<1x8x32xf32> to vector<8x32xf32>
    %c0_2 = arith.constant 0 : index
    %c0_3 = arith.constant 0 : index
    %c0_4 = arith.constant 0 : index
    %2 = vector.load %arg2[%c0_2, %c0_3, %c0_4] : memref<1x8x32xf32, #tpu.memory_space<vmem>>, vector<1x8x32xf32>
    %3 = vector.shape_cast %2 : vector<1x8x32xf32> to vector<8x32xf32>
    %c0_5 = arith.constant 0 : index
    %c0_6 = arith.constant 0 : index
    %c0_7 = arith.constant 0 : index
    %4 = vector.load %arg3[%c0_5, %c0_6, %c0_7] : memref<1x8x8xf32, #tpu.memory_space<vmem>>, vector<1x8x8xf32>
    %5 = vector.shape_cast %4 : vector<1x8x8xf32> to vector<8x8xf32>
    %6 = arith.truncf %1 : vector<8x32xf32> to vector<8x32xbf16>
    %7 = arith.truncf %3 : vector<8x32xf32> to vector<8x32xbf16>
    %c0_8 = arith.constant 0 : index
    %c0_9 = arith.constant 0 : index
    %8 = vector.load %arg4[%c0_8, %c0_9] : memref<32x32xbf16, #tpu.memory_space<vmem>>, vector<32x32xbf16>
    %cst = arith.constant dense<0.000000e+00> : vector<8x32xf32>
    %9 = tpu.matmul %6, %8, %cst {dimension_numbers = #tpu.dot_dimension_numbers<[1], [0], [0], [1], [0, 0, 1, 1], [], []>} : vector<8x32xbf16>, vector<32x32xbf16>, vector<8x32xf32> -> vector<8x32xf32>
    %cst_10 = arith.constant 0.176776692 : f32
    %10 = vector.broadcast %cst_10 : f32 to vector<8x32xf32>
    %11 = arith.mulf %9, %10 : vector<8x32xf32>
    %c0_11 = arith.constant 0 : index
    %c0_12 = arith.constant 0 : index
    %12 = vector.load %arg5[%c0_11, %c0_12] : memref<32x32xbf16, #tpu.memory_space<vmem>>, vector<32x32xbf16>
    %cst_13 = arith.constant dense<0.000000e+00> : vector<8x32xf32>
    %13 = tpu.matmul %7, %12, %cst_13 {dimension_numbers = #tpu.dot_dimension_numbers<[1], [0], [0], [1], [0, 0, 1, 1], [], []>} : vector<8x32xbf16>, vector<32x32xbf16>, vector<8x32xf32> -> vector<8x32xf32>
    %c0_14 = arith.constant 0 : index
    %c0_15 = arith.constant 0 : index
    %14 = vector.load %arg6[%c0_14, %c0_15] : memref<32x32xbf16, #tpu.memory_space<vmem>>, vector<32x32xbf16>
    %cst_16 = arith.constant dense<0.000000e+00> : vector<8x32xf32>
    %15 = tpu.matmul %7, %14, %cst_16 {dimension_numbers = #tpu.dot_dimension_numbers<[1], [0], [0], [1], [0, 0, 1, 1], [], []>} : vector<8x32xbf16>, vector<32x32xbf16>, vector<8x32xf32> -> vector<8x32xf32>
    %16 = vector.extract_strided_slice %11 {offsets = [0, 0], sizes = [8, 8], strides = [1, 1]} : vector<8x32xf32> to vector<8x8xf32>
    %17 = arith.truncf %16 : vector<8x8xf32> to vector<8x8xbf16>
    %18 = vector.extract_strided_slice %13 {offsets = [0, 0], sizes = [8, 8], strides = [1, 1]} : vector<8x32xf32> to vector<8x8xf32>
    %19 = arith.truncf %18 : vector<8x8xf32> to vector<8x8xbf16>
    %cst_17 = arith.constant dense<0.000000e+00> : vector<8x8xf32>
    %20 = tpu.matmul %17, %19, %cst_17 {dimension_numbers = #tpu.dot_dimension_numbers<[1], [1], [0], [0], [0, 0, 1, 0], [], []>} : vector<8x8xbf16>, vector<8x8xbf16>, vector<8x8xf32> -> vector<8x8xf32>
    %21 = arith.addf %20, %5 : vector<8x8xf32>
    %cst_18 = arith.constant dense<0xFF800000> : vector<8xf32>
    %22 = vector.multi_reduction <maximumf>, %21, %cst_18 [1] : vector<8x8xf32> to vector<8xf32>
    %23 = vector.shape_cast %22 : vector<8xf32> to vector<8x1xf32>
    %24 = vector.broadcast %23 : vector<8x1xf32> to vector<8x8xf32>
    %25 = arith.subf %21, %24 : vector<8x8xf32>
    %26 = math.exp %25 : vector<8x8xf32>
    %cst_19 = arith.constant dense<0.000000e+00> : vector<8xf32>
    %27 = vector.multi_reduction <add>, %26, %cst_19 [1] : vector<8x8xf32> to vector<8xf32>
    %28 = vector.shape_cast %27 : vector<8xf32> to vector<8x1xf32>
    %29 = tpu.reciprocal %28 {approx = true} : vector<8x1xf32> -> vector<8x1xf32>
    %30 = vector.broadcast %29 : vector<8x1xf32> to vector<8x8xf32>
    %31 = arith.mulf %26, %30 : vector<8x8xf32>
    %32 = arith.truncf %31 : vector<8x8xf32> to vector<8x8xbf16>
    %33 = vector.extract_strided_slice %15 {offsets = [0, 0], sizes = [8, 8], strides = [1, 1]} : vector<8x32xf32> to vector<8x8xf32>
    %34 = arith.truncf %33 : vector<8x8xf32> to vector<8x8xbf16>
    %cst_20 = arith.constant dense<0.000000e+00> : vector<8x8xf32>
    %35 = tpu.matmul %32, %34, %cst_20 {dimension_numbers = #tpu.dot_dimension_numbers<[1], [0], [0], [1], [0, 0, 1, 1], [], []>} : vector<8x8xbf16>, vector<8x8xbf16>, vector<8x8xf32> -> vector<8x8xf32>
    %36 = vector.extract_strided_slice %11 {offsets = [0, 8], sizes = [8, 8], strides = [1, 1]} : vector<8x32xf32> to vector<8x8xf32>
    %37 = arith.truncf %36 : vector<8x8xf32> to vector<8x8xbf16>
    %38 = vector.extract_strided_slice %13 {offsets = [0, 8], sizes = [8, 8], strides = [1, 1]} : vector<8x32xf32> to vector<8x8xf32>
    %39 = arith.truncf %38 : vector<8x8xf32> to vector<8x8xbf16>
    %cst_21 = arith.constant dense<0.000000e+00> : vector<8x8xf32>
    %40 = tpu.matmul %37, %39, %cst_21 {dimension_numbers = #tpu.dot_dimension_numbers<[1], [1], [0], [0], [0, 0, 1, 0], [], []>} : vector<8x8xbf16>, vector<8x8xbf16>, vector<8x8xf32> -> vector<8x8xf32>
    %41 = arith.addf %40, %5 : vector<8x8xf32>
    %cst_22 = arith.constant dense<0xFF800000> : vector<8xf32>
    %42 = vector.multi_reduction <maximumf>, %41, %cst_22 [1] : vector<8x8xf32> to vector<8xf32>
    %43 = vector.shape_cast %42 : vector<8xf32> to vector<8x1xf32>
    %44 = vector.broadcast %43 : vector<8x1xf32> to vector<8x8xf32>
    %45 = arith.subf %41, %44 : vector<8x8xf32>
    %46 = math.exp %45 : vector<8x8xf32>
    %cst_23 = arith.constant dense<0.000000e+00> : vector<8xf32>
    %47 = vector.multi_reduction <add>, %46, %cst_23 [1] : vector<8x8xf32> to vector<8xf32>
    %48 = vector.shape_cast %47 : vector<8xf32> to vector<8x1xf32>
    %49 = tpu.reciprocal %48 {approx = true} : vector<8x1xf32> -> vector<8x1xf32>
    %50 = vector.broadcast %49 : vector<8x1xf32> to vector<8x8xf32>
    %51 = arith.mulf %46, %50 : vector<8x8xf32>
    %52 = arith.truncf %51 : vector<8x8xf32> to vector<8x8xbf16>
    %53 = vector.extract_strided_slice %15 {offsets = [0, 8], sizes = [8, 8], strides = [1, 1]} : vector<8x32xf32> to vector<8x8xf32>
    %54 = arith.truncf %53 : vector<8x8xf32> to vector<8x8xbf16>
    %cst_24 = arith.constant dense<0.000000e+00> : vector<8x8xf32>
    %55 = tpu.matmul %52, %54, %cst_24 {dimension_numbers = #tpu.dot_dimension_numbers<[1], [0], [0], [1], [0, 0, 1, 1], [], []>} : vector<8x8xbf16>, vector<8x8xbf16>, vector<8x8xf32> -> vector<8x8xf32>
    %56 = vector.extract_strided_slice %11 {offsets = [0, 16], sizes = [8, 8], strides = [1, 1]} : vector<8x32xf32> to vector<8x8xf32>
    %57 = arith.truncf %56 : vector<8x8xf32> to vector<8x8xbf16>
    %58 = vector.extract_strided_slice %13 {offsets = [0, 16], sizes = [8, 8], strides = [1, 1]} : vector<8x32xf32> to vector<8x8xf32>
    %59 = arith.truncf %58 : vector<8x8xf32> to vector<8x8xbf16>
    %cst_25 = arith.constant dense<0.000000e+00> : vector<8x8xf32>
    %60 = tpu.matmul %57, %59, %cst_25 {dimension_numbers = #tpu.dot_dimension_numbers<[1], [1], [0], [0], [0, 0, 1, 0], [], []>} : vector<8x8xbf16>, vector<8x8xbf16>, vector<8x8xf32> -> vector<8x8xf32>
    %61 = arith.addf %60, %5 : vector<8x8xf32>
    %cst_26 = arith.constant dense<0xFF800000> : vector<8xf32>
    %62 = vector.multi_reduction <maximumf>, %61, %cst_26 [1] : vector<8x8xf32> to vector<8xf32>
    %63 = vector.shape_cast %62 : vector<8xf32> to vector<8x1xf32>
    %64 = vector.broadcast %63 : vector<8x1xf32> to vector<8x8xf32>
    %65 = arith.subf %61, %64 : vector<8x8xf32>
    %66 = math.exp %65 : vector<8x8xf32>
    %cst_27 = arith.constant dense<0.000000e+00> : vector<8xf32>
    %67 = vector.multi_reduction <add>, %66, %cst_27 [1] : vector<8x8xf32> to vector<8xf32>
    %68 = vector.shape_cast %67 : vector<8xf32> to vector<8x1xf32>
    %69 = tpu.reciprocal %68 {approx = true} : vector<8x1xf32> -> vector<8x1xf32>
    %70 = vector.broadcast %69 : vector<8x1xf32> to vector<8x8xf32>
    %71 = arith.mulf %66, %70 : vector<8x8xf32>
    %72 = arith.truncf %71 : vector<8x8xf32> to vector<8x8xbf16>
    %73 = vector.extract_strided_slice %15 {offsets = [0, 16], sizes = [8, 8], strides = [1, 1]} : vector<8x32xf32> to vector<8x8xf32>
    %74 = arith.truncf %73 : vector<8x8xf32> to vector<8x8xbf16>
    %cst_28 = arith.constant dense<0.000000e+00> : vector<8x8xf32>
    %75 = tpu.matmul %72, %74, %cst_28 {dimension_numbers = #tpu.dot_dimension_numbers<[1], [0], [0], [1], [0, 0, 1, 1], [], []>} : vector<8x8xbf16>, vector<8x8xbf16>, vector<8x8xf32> -> vector<8x8xf32>
    %76 = vector.extract_strided_slice %11 {offsets = [0, 24], sizes = [8, 8], strides = [1, 1]} : vector<8x32xf32> to vector<8x8xf32>
    %77 = arith.truncf %76 : vector<8x8xf32> to vector<8x8xbf16>
    %78 = vector.extract_strided_slice %13 {offsets = [0, 24], sizes = [8, 8], strides = [1, 1]} : vector<8x32xf32> to vector<8x8xf32>
    %79 = arith.truncf %78 : vector<8x8xf32> to vector<8x8xbf16>
    %cst_29 = arith.constant dense<0.000000e+00> : vector<8x8xf32>
    %80 = tpu.matmul %77, %79, %cst_29 {dimension_numbers = #tpu.dot_dimension_numbers<[1], [1], [0], [0], [0, 0, 1, 0], [], []>} : vector<8x8xbf16>, vector<8x8xbf16>, vector<8x8xf32> -> vector<8x8xf32>
    %81 = arith.addf %80, %5 : vector<8x8xf32>
    %cst_30 = arith.constant dense<0xFF800000> : vector<8xf32>
    %82 = vector.multi_reduction <maximumf>, %81, %cst_30 [1] : vector<8x8xf32> to vector<8xf32>
    %83 = vector.shape_cast %82 : vector<8xf32> to vector<8x1xf32>
    %84 = vector.broadcast %83 : vector<8x1xf32> to vector<8x8xf32>
    %85 = arith.subf %81, %84 : vector<8x8xf32>
    %86 = math.exp %85 : vector<8x8xf32>
    %cst_31 = arith.constant dense<0.000000e+00> : vector<8xf32>
    %87 = vector.multi_reduction <add>, %86, %cst_31 [1] : vector<8x8xf32> to vector<8xf32>
    %88 = vector.shape_cast %87 : vector<8xf32> to vector<8x1xf32>
    %89 = tpu.reciprocal %88 {approx = true} : vector<8x1xf32> -> vector<8x1xf32>
    %90 = vector.broadcast %89 : vector<8x1xf32> to vector<8x8xf32>
    %91 = arith.mulf %86, %90 : vector<8x8xf32>
    %92 = arith.truncf %91 : vector<8x8xf32> to vector<8x8xbf16>
    %93 = vector.extract_strided_slice %15 {offsets = [0, 24], sizes = [8, 8], strides = [1, 1]} : vector<8x32xf32> to vector<8x8xf32>
    %94 = arith.truncf %93 : vector<8x8xf32> to vector<8x8xbf16>
    %cst_32 = arith.constant dense<0.000000e+00> : vector<8x8xf32>
    %95 = tpu.matmul %92, %94, %cst_32 {dimension_numbers = #tpu.dot_dimension_numbers<[1], [0], [0], [1], [0, 0, 1, 1], [], []>} : vector<8x8xbf16>, vector<8x8xbf16>, vector<8x8xf32> -> vector<8x8xf32>
    %96 = tpu.concatenate %35, %55, %75, %95 in 1 : vector<8x8xf32>, vector<8x8xf32>, vector<8x8xf32>, vector<8x8xf32> -> vector<8x32xf32>
    %97 = arith.truncf %96 : vector<8x32xf32> to vector<8x32xbf16>
    %c0_33 = arith.constant 0 : index
    %c0_34 = arith.constant 0 : index
    %98 = vector.load %arg7[%c0_33, %c0_34] : memref<32x32xbf16, #tpu.memory_space<vmem>>, vector<32x32xbf16>
    %cst_35 = arith.constant dense<0.000000e+00> : vector<8x32xf32>
    %99 = tpu.matmul %97, %98, %cst_35 {dimension_numbers = #tpu.dot_dimension_numbers<[1], [0], [0], [1], [0, 0, 1, 1], [], []>} : vector<8x32xbf16>, vector<32x32xbf16>, vector<8x32xf32> -> vector<8x32xf32>
    %c0_36 = arith.constant 0 : index
    %c0_37 = arith.constant 0 : index
    %100 = vector.load %arg8[%c0_36, %c0_37] : memref<1x32xf32, #tpu.memory_space<vmem>>, vector<1x32xf32>
    %101 = vector.broadcast %100 : vector<1x32xf32> to vector<8x32xf32>
    %102 = arith.addf %99, %101 : vector<8x32xf32>
    %103 = arith.addf %102, %1 : vector<8x32xf32>
    %cst_38 = arith.constant dense<0.000000e+00> : vector<8xf32>
    %104 = vector.multi_reduction <add>, %103, %cst_38 [1] : vector<8x32xf32> to vector<8xf32>
    %105 = vector.shape_cast %104 : vector<8xf32> to vector<8x1xf32>
    %cst_39 = arith.constant 3.200000e+01 : f32
    %106 = vector.broadcast %cst_39 : f32 to vector<8x1xf32>
    %107 = arith.divf %105, %106 : vector<8x1xf32>
    %108 = vector.broadcast %107 : vector<8x1xf32> to vector<8x32xf32>
    %109 = arith.subf %103, %108 : vector<8x32xf32>
    %110 = arith.mulf %109, %109 : vector<8x32xf32>
    %cst_40 = arith.constant dense<0.000000e+00> : vector<8xf32>
    %111 = vector.multi_reduction <add>, %110, %cst_40 [1] : vector<8x32xf32> to vector<8xf32>
    %112 = vector.shape_cast %111 : vector<8xf32> to vector<8x1xf32>
    %cst_41 = arith.constant 3.200000e+01 : f32
    %113 = vector.broadcast %cst_41 : f32 to vector<8x1xf32>
    %114 = arith.divf %112, %113 : vector<8x1xf32>
    %115 = vector.broadcast %107 : vector<8x1xf32> to vector<8x32xf32>
    %116 = arith.subf %103, %115 : vector<8x32xf32>
    %cst_42 = arith.constant 9.99999974E-6 : f32
    %117 = vector.broadcast %cst_42 : f32 to vector<8x1xf32>
    %118 = arith.addf %114, %117 : vector<8x1xf32>
    %119 = math.rsqrt %118 : vector<8x1xf32>
    %120 = vector.broadcast %119 : vector<8x1xf32> to vector<8x32xf32>
    %121 = arith.mulf %116, %120 : vector<8x32xf32>
    %c0_43 = arith.constant 0 : index
    %c0_44 = arith.constant 0 : index
    %122 = vector.load %arg9[%c0_43, %c0_44] : memref<1x32xf32, #tpu.memory_space<vmem>>, vector<1x32xf32>
    %123 = vector.broadcast %122 : vector<1x32xf32> to vector<8x32xf32>
    %124 = arith.mulf %121, %123 : vector<8x32xf32>
    %c0_45 = arith.constant 0 : index
    %c0_46 = arith.constant 0 : index
    %125 = vector.load %arg10[%c0_45, %c0_46] : memref<1x32xf32, #tpu.memory_space<vmem>>, vector<1x32xf32>
    %126 = vector.broadcast %125 : vector<1x32xf32> to vector<8x32xf32>
    %127 = arith.addf %124, %126 : vector<8x32xf32>
    %c0_47 = arith.constant 0 : index
    %c0_48 = arith.constant 0 : index
    %c0_49 = arith.constant 0 : index
    %128 = vector.load %arg11[%c0_47, %c0_48, %c0_49] : memref<1x8x32xf32, #tpu.memory_space<vmem>>, vector<1x8x32xf32>
    %129 = vector.shape_cast %128 : vector<1x8x32xf32> to vector<8x32xf32>
    %130 = vector.shape_cast %127 : vector<8x32xf32> to vector<1x8x32xf32>
    tpu.vector_store %arg11[%c0_47, %c0_48, %c0_49], %130 {strides = array<i32>} : memref<1x8x32xf32, #tpu.memory_space<vmem>>, vector<1x8x32xf32>,
    return
  }
  func.func @transform_0(%arg0: i32) -> (i32, i32, i32) {
    %c0_i32 = arith.constant 0 : i32
    %c0_i32_0 = arith.constant 0 : i32
    %c0_i32_1 = arith.constant 0 : i32
    return %arg0, %c0_i32, %c0_i32_0 : i32, i32, i32
  }
  func.func @transform_1(%arg0: i32) -> (i32, i32, i32) {
    %c0_i32 = arith.constant 0 : i32
    %c0_i32_0 = arith.constant 0 : i32
    %c0_i32_1 = arith.constant 0 : i32
    return %arg0, %c0_i32, %c0_i32_0 : i32, i32, i32
  }
  func.func @transform_2(%arg0: i32) -> (i32, i32, i32) {
    %c0_i32 = arith.constant 0 : i32
    %c0_i32_0 = arith.constant 0 : i32
    %c0_i32_1 = arith.constant 0 : i32
    return %arg0, %c0_i32, %c0_i32_0 : i32, i32, i32
  }
  func.func @transform_3(%arg0: i32) -> (i32, i32) {
    %c0_i32 = arith.constant 0 : i32
    %c0_i32_0 = arith.constant 0 : i32
    %c0_i32_1 = arith.constant 0 : i32
    return %c0_i32, %c0_i32_0 : i32, i32
  }
  func.func @transform_4(%arg0: i32) -> (i32, i32) {
    %c0_i32 = arith.constant 0 : i32
    %c0_i32_0 = arith.constant 0 : i32
    %c0_i32_1 = arith.constant 0 : i32
    return %c0_i32, %c0_i32_0 : i32, i32
  }
  func.func @transform_5(%arg0: i32) -> (i32, i32) {
    %c0_i32 = arith.constant 0 : i32
    %c0_i32_0 = arith.constant 0 : i32
    %c0_i32_1 = arith.constant 0 : i32
    return %c0_i32, %c0_i32_0 : i32, i32
  }
  func.func @transform_6(%arg0: i32) -> (i32, i32) {
    %c0_i32 = arith.constant 0 : i32
    %c0_i32_0 = arith.constant 0 : i32
    %c0_i32_1 = arith.constant 0 : i32
    return %c0_i32, %c0_i32_0 : i32, i32
  }
  func.func @transform_7(%arg0: i32) -> (i32, i32) {
    %c0_i32 = arith.constant 0 : i32
    %c0_i32_0 = arith.constant 0 : i32
    %c0_i32_1 = arith.constant 0 : i32
    return %c0_i32, %c0_i32_0 : i32, i32
  }
  func.func @transform_8(%arg0: i32) -> (i32, i32) {
    %c0_i32 = arith.constant 0 : i32
    %c0_i32_0 = arith.constant 0 : i32
    %c0_i32_1 = arith.constant 0 : i32
    return %c0_i32, %c0_i32_0 : i32, i32
  }
  func.func @transform_9(%arg0: i32) -> (i32, i32) {
    %c0_i32 = arith.constant 0 : i32
    %c0_i32_0 = arith.constant 0 : i32
    %c0_i32_1 = arith.constant 0 : i32
    return %c0_i32, %c0_i32_0 : i32, i32
  }
  func.func @transform_10(%arg0: i32) -> (i32, i32, i32) {
    %c0_i32 = arith.constant 0 : i32
    %c0_i32_0 = arith.constant 0 : i32
    %c0_i32_1 = arith.constant 0 : i32
    return %arg0, %c0_i32, %c0_i32_0 : i32, i32, i32
  }
}

</mosaic_0001>

<bundles_post_ra>
// kernel: decoder_forward.13
= control target key start
LH: loop header
LB: loop body
LE: loop exit
PB: predicated region body
PF: predicated region fallthrough
CT: control target
= control target key end

     0   :  { %v111_v0 = vmov 0.0   ;;  %vm112_vm0 = vmmov 0   ;;  %vm41_vm1 = vcmask 261120   ;;  %s154_s1 = inlined_call_operand.vmem [shape: bf16[32,128], index: 1, kind: input, shape index: {}]   ;;  %s155_s0 = inlined_call_operand.vmem [shape: f32[16,32], index: 0, kind: input, shape index: {}]   ;;  %s156_s2 = inlined_call_operand.vmem [shape: f32[1,128], index: 2, kind: input, shape index: {}]   ;;  %s157_s3 = inlined_call_operand.vmem [shape: f32[16,128], index: 3, kind: output, shape index: {}]  }
   0x1   :  { %99 = vmatprep.subr.bf16.mxu0 %v111_v0  ;;  %v109_v1 = vld [vmem:[%s154_s1 + $0x8] sm:$0xff]   ;;  %103 = vmatprep.mubr.msk.bf16.mxu0 %vm112_vm0, %v111_v0  ;;  %v110_v2 = vld [vmem:[%s154_s1] sm:$0xff]  }
   0x2   :  { %100 = vmatpush3.bf16.msra.mxu0 %v109_v1  ;;  %v15_v3 = vld [vmem:[%s155_s0] sm:$0xff]  ;;  %v16_v4 = vld [vmem:[%s155_s0 + $0x8] sm:$0xff] }
   0x3   :  { %101 = vmatprep.subr.bf16.mxu0 %v111_v0  ;;  %v17_v5 = vpack.c.bf16 %v16_v4, %v15_v3  ;;  %v92_v6 = vld [vmem:[%s156_s2] ss:$0 sm:$0xff] }
   0x6   :  { %102 = vmatpush3.bf16.msra.mxu0 %v110_v2 }
   0x9   :  { %104 = vmatmul.mubr.msk.bf16.vlgmr.msra.gmra.mxu0 %vm41_vm1, %v17_v5 }
  0xc9   :  { %v79_v7 = vpop.f32.mrf.mxu0 }
  0xca   :  { %v80_v8 = vadd.f32 %v92_v6, %v79_v7 }
  0xcb   :  { %v105_v9 = vpop.f32.mrf.mxu0 }
  0xcc   :  { %86 = vst [vmem:[%s157_s3] sm:$0xff] %v80_v8 }
  0xcd   :  { %v82_v10 = vpop.f32.mrf.mxu0 }
  0xce   :  { %v83_v11 = vadd.f32 %v92_v6, %v82_v10 }
  0xcf   :  { %v106_v12 = vpop.f32.mrf.mxu0 }
  0xd0   :  { %87 = vst [vmem:[%s157_s3 + $0x8] sm:$0xff] %v83_v11 }

// kernel: decoder_forward.9
= control target key start
LH: loop header
LB: loop body
LE: loop exit
PB: predicated region body
PF: predicated region fallthrough
CT: control target
= control target key end

     0   :  { %s631_s24 = smov 0   ;;  %s689_s0 = inlined_call_operand.vmem [shape: f32[2,8,32], index: 0, kind: input, shape index: {}]   ;;  %s690_s1 = inlined_call_operand.vmem [shape: bf16[32,64], index: 1, kind: input, shape index: {}]   ;;  %s691_s2 = inlined_call_operand.vmem [shape: f32[1,64], index: 2, kind: input, shape index: {}]   ;;  %s692_s3 = inlined_call_operand.vmem [shape: bf16[64,32], index: 3, kind: input, shape index: {}]   ;;  %s693_s4 = inlined_call_operand.vmem [shape: f32[1,32], index: 4, kind: input, shape index: {}, may-alias: {4,6}]   ;;  %s694_s5 = inlined_call_operand.vmem [shape: f32[1,32], index: 5, kind: input, shape index: {}]   ;;  %s695_s6 = inlined_call_operand.vmem [shape: f32[1,32], index: 6, kind: input, shape index: {}, may-alias: {4,6}]   ;;  %s696_s7 = inlined_call_operand.vmem [shape: f32[2,8,32], index: 7, kind: output, shape index: {}]  }
   0x1 LB: > { %s514_s25 = sadd.s32 4294967295, %s587_s24   ;;  %p518_p0 = scmp.ge.s32.totalorder %s587_s24, 1  ;;  %s587_s24 = sphi %s631_s24, %s17_s24  }
   0x2   : > { %p236_p1 = scmp.lt.s32.totalorder %s587_s24, 3 }
   0x4   : > { %p237_p2 = pnand %p518_p0, %p236_p1 }
   0x5   : > { %p266_p3 = scmp.lt.s32.totalorder (!%p237_p2), %s514_s25, 1 }
   0x6   : > { %240 = sbr.rel (%p237_p2) target bundleno = 725 (0x2d5), region = 48 }
   0xb   : > { %v573_v0 = vld [vmem:[%s690_s1 + $0x8] sm:$0xff]   ;;  %v589_v1 = vmov 0.0   ;;  %v574_v2 = vld [vmem:[%s690_s1] sm:$0xff]   ;;  %vm590_vm0 = vmmov 0   ;;  %v575_v3 = vld [vmem:[%s692_s3 + $0x18] sm:$0xff]   ;;  %s698_s25 = smov (!%p266_p3, %s514_s25), 1 }
   0xc   : > { %543 = vmatprep.subr.bf16.mxu0 %v589_v1  ;;  %551 = vmatprep.subr.bf16.mxu1 %v589_v1  ;;  %v576_v4 = vld [vmem:[%s692_s3 + $0x10] sm:$0xff]   ;;  %s519_s11 = sshll.u32 %s698_s25, 3  ;;  %vm300_vm1 = vcmask 261120   ;;  %v577_v7 = vld [vmem:[%s692_s3 + $0x8] sm:$0xff]   ;;  %v578_v8 = vld [vmem:[%s692_s3] sm:$0xff]   ;;  %vm385_vm2 = vcmask 523264  }
   0xd   : > { %544 = vmatpush3.bf16.msra.mxu0 %v573_v0  ;;  %547 = vmatprep.mubr.msk.bf16.mxu0 %vm590_vm0, %v589_v1  ;;  %s269_s14 = scalar_lea.vmem %s689_s0, %s519_s11  ;;  %v521_v9 = vld [vmem:[%s691_s2] ss:$0 sm:$0xff]  ;;  %s273_s8 = scalar_lea.vmem %s696_s7, %s519_s11 }
   0xe   : > { %545 = vmatprep.subr.bf16.mxu0 %v589_v1  ;;  %559 = vmatprep.mubr.msk.bf16.mxu1 %vm590_vm0, %v589_v1  ;;  %v275_v5 = vld [vmem:[%s269_s14] sm:$0xff] }
   0xf   : > { %552 = vmatpush3.bf16.msra.mxu1 %v575_v3  ;;  %v276_v6 = vpack.c.bf16 %v275_v5, %v275_v5  ;;  %v525_v17 = vld [vmem:[%s693_s4] ss:$0 sm:$0xff] }
  0x10   : > { %553 = vmatprep.subr.bf16.mxu1 %v589_v1  ;;  %v531_v34 = vld [vmem:[%s694_s5] ss:$0 sm:$0xff] }
  0x11   : > { %546 = vmatpush3.bf16.msra.mxu0 %v574_v2  ;;  %v532_v36 = vld [vmem:[%s695_s6] ss:$0 sm:$0xff] }
  0x13   : > { %554 = vmatpush3.bf16.msra.mxu1 %v576_v4 }
  0x14   : > { %555 = vmatprep.subr.bf16.mxu1 %v589_v1  ;;  %548 = vmatmul.mubr.msk.bf16.vlgmr.msra.gmra.mxu0 %vm300_vm1, %v276_v6 }
  0x17   : > { %556 = vmatpush3.bf16.msra.mxu1 %v577_v7 }
  0x18   : > { %557 = vmatprep.subr.bf16.mxu1 %v589_v1 }
  0x1b   : > { %558 = vmatpush3.bf16.msra.mxu1 %v578_v8 }
  0xd4   : > { %v338_v10 = vpop.f32.mrf.mxu0 }
  0xd5   : > { %v339_v11 = vadd.f32 %v521_v9, %v338_v10 }
  0xd6   : > { %v549_v12 = vpop.f32.mrf.mxu0 }
  0xd7   : > { %v344_v13 = vmax.f32 %v339_v11, 0.0 }
  0xd8   : > { %v341_v14 = vpop.f32.mrf.mxu0 }
  0xd9   : > { %v345_v15 = vpack.c.bf16 %v344_v13, %v344_v13 }
  0xda   : > { %v550_v16 = vpop.f32.mrf.mxu0 }
  0xdb   : > { %560 = vmatmul.mubr.msk.bf16.vlgmr.msra.gmra.mxu1 %vm385_vm2, %v345_v15 }
 0x19b   : > { %v423_v18 = vpop.f32.mrf.mxu1 }
 0x19c   : > { %v424_v19 = vadd.f32 %v525_v17, %v423_v18 }
 0x19d   : > { %v561_v20 = vpop.f32.mrf.mxu1 }
 0x19e   : > { %v429_v21 = vadd.f32 %v424_v19, %v275_v5 }
 0x19f   : > { %v426_v22 = vpop.f32.mrf.mxu1 }
 0x1a0   : > { %v430_v23 = vsel %vm300_vm1, %v429_v21, 0.0 }
 0x1a1   : > { %431 = vadd.xlane.f32.xlu0 %v430_v23  ;;  %v562_v24 = vpop.f32.mrf.mxu1 }
 0x22a   : > { %v432_v25 = vpop.xlane.xlu0 %431 }
 0x22b   : > { %v434_v26 = vmul.f32 0.03125, %v432_v25 }
 0x22d   : > { %v435_v27 = vsub.f32 %v429_v21, %v434_v26 }
 0x22f   : > { %v436_v28 = vmul.f32 %v435_v27, %v435_v27 }
 0x231   : > { %v437_v29 = vsel %vm300_vm1, %v436_v28, 0.0 }
 0x232   : > { %438 = vadd.xlane.f32.xlu0 %v437_v29 }
 0x2bb   : > { %v439_v30 = vpop.xlane.xlu0 %438 }
 0x2bc   : > { %v440_v31 = vmul.f32 0.03125, %v439_v30 }
 0x2be   : > { %v441_v32 = vadd.f32 1e-05, %v440_v31 }
 0x2c0   : > { %579 = vrsqrt.f32 %v441_v32 }
 0x2cd   : > { %v580_v33 = vpop.eup %579 }
 0x2ce   : > { %v443_v35 = vmul.f32 %v580_v33, %v435_v27 }
 0x2d0   : > { %v451_v37 = vmul.f32 %v531_v34, %v443_v35 }
 0x2d2   : > { %v459_v38 = vadd.f32 %v532_v36, %v451_v37 }
 0x2d4   : > { %460 = vst.msk [vmem:[%s273_s8] sm:$0xff] %vm300_vm1, %v459_v38 }
 0x2d5 PF: > { %s17_s24 = sadd.s32 1, %s587_s24  }
 0x2d6   : > { %p14_p4 = scmp.ge.s32.totalorder %s17_s24, 4  }
 0x2d8   :  { %16 = sbr.rel (!%p14_p4) target bundleno = 1 (0x1), region = 78 }

// kernel: decoder_forward.7
= control target key start
LH: loop header
LB: loop body
LE: loop exit
PB: predicated region body
PF: predicated region fallthrough
CT: control target
= control target key end

     0   :  { %s1461_s13 = smov 0   ;;  %s1609_s0 = inlined_call_operand.vmem [shape: f32[2,8,32], index: 0, kind: input, shape index: {}, may-alias: {0,1}]   ;;  %s1610_s1 = inlined_call_operand.vmem [shape: f32[2,8,32], index: 1, kind: input, shape index: {}, may-alias: {0,1}]   ;;  %s1611_s2 = inlined_call_operand.vmem [shape: f32[2,8,8], index: 2, kind: input, shape index: {}]   ;;  %s1612_s3 = inlined_call_operand.vmem [shape: bf16[32,32], index: 3, kind: input, shape index: {}]   ;;  %s1613_s4 = inlined_call_operand.vmem [shape: bf16[32,32], index: 4, kind: input, shape index: {}]   ;;  %s1614_s5 = inlined_call_operand.vmem [shape: bf16[32,32], index: 5, kind: input, shape index: {}]   ;;  %s1615_s6 = inlined_call_operand.vmem [shape: bf16[32,32], index: 6, kind: input, shape index: {}]   ;;  %s1616_s7 = inlined_call_operand.vmem [shape: f32[1,32], index: 7, kind: input, shape index: {}, may-alias: {7,9}]   ;;  %s1617_s8 = inlined_call_operand.vmem [shape: f32[1,32], index: 8, kind: input, shape index: {}]   ;;  %s1618_s9 = inlined_call_operand.vmem [shape: f32[1,32], index: 9, kind: input, shape index: {}, may-alias: {7,9}]   ;;  %s1619_s10 = inlined_call_operand.vmem [shape: f32[2,8,32], index: 10, kind: output, shape index: {}]  }
   0x1 LB: > { %s1206_s14 = sadd.s32 4294967295, %s1396_s13   ;;  %p1210_p0 = scmp.ge.s32.totalorder %s1396_s13, 1  ;;  %s1396_s13 = sphi %s1461_s13, %s20_s13  }
   0x2   : > { %p329_p1 = scmp.lt.s32.totalorder %s1396_s13, 3 }
   0x4   : > { %p330_p2 = pnand %p1210_p0, %p329_p1 }
   0x5   : > { %p373_p3 = scmp.lt.s32.totalorder (!%p330_p2), %s1206_s14, 1  ;;  %s1400_s30 = smov (!%p330_p2), 112  }
   0x6   : > { %333 = sbr.rel (%p330_p2) target bundleno = 1681 (0x691), region = 60  ;;  %s1401_s11 = smov (!%p330_p2), 120  }
   0x7   : > { %s1402_s12 = smov (!%p330_p2), 104   ;;  %s1403_s24 = smov (!%p330_p2), 8  }
   0x8   : > { %s1404_s27 = smov (!%p330_p2), 16   ;;  %s1405_s28 = smov (!%p330_p2), 24  }
   0xb   : > { %v1364_v0 = vld [vmem:[%s1612_s3 + $0x8] sm:$0xff]   ;;  %v1398_v1 = vmov 0.0   ;;  %v1366_v3 = vld [vmem:[%s1612_s3] sm:$0xff]   ;;  %vm1399_vm0 = vmmov 0   ;;  %s1621_s14 = smov (!%p373_p3, %s1206_s14), 1  ;;  %vm411_vm1 = vcmask 261120  }
   0xc   : > { %1268 = vmatprep.subr.bf16.mxu0 %v1398_v1  ;;  %1276 = vmatprep.subr.bf16.mxu1 %v1398_v1  ;;  %v1365_v2 = vld [vmem:[%s1613_s4 + $0x8] sm:$0xff]   ;;  %v1367_v4 = vld [vmem:[%s1613_s4] sm:$0xff]   ;;  %s1489_s23 = sshll.u32 %s1621_s14, 3  ;;  %vm573_vm2 = vcmask 64512   ;;  %vm636_vm3 = vcmask 1043456   ;;  %vm1026_vm4 = vcmask 130048  }
   0xd   : > { %1269 = vmatpush3.bf16.msra.mxu0 %v1364_v0  ;;  %1272 = vmatprep.mubr.msk.bf16.mxu0 %vm1399_vm0, %v1398_v1  ;;  %s376_s26 = scalar_lea.vmem %s1609_s0, %s1489_s23  ;;  %s380_s29 = scalar_lea.vmem %s1610_s1, %s1489_s23  ;;  %v1368_v21 = vld [vmem:[%s1614_s5 + $0x8] sm:$0xff]   ;;  %v1369_v22 = vld [vmem:[%s1614_s5] sm:$0xff]   ;;  %vm1028_vm5 = vcmask 195584  }
   0xe   : > { %1277 = vmatpush3.bf16.msra.mxu1 %v1365_v2  ;;  %1270 = vmatprep.subr.bf16.mxu0 %v1398_v1  ;;  %v1496_v5 = vld [vmem:[%s376_s26] sm:$0xff]  ;;  %s384_s20 = scalar_lea.vmem %s1611_s2, %s1489_s23  ;;  %s388_s18 = scalar_lea.vmem %s1619_s10, %s1489_s23 }
   0xf   : > { %1278 = vmatprep.subr.bf16.mxu1 %v1398_v1  ;;  %1280 = vmatprep.mubr.msk.bf16.mxu1 %vm1399_vm0, %v1398_v1  ;;  %v393_v6 = vpack.c.bf16 %v1496_v5, %v1496_v5  ;;  %v391_v7 = vld [vmem:[%s380_s29] sm:$0xff] }
  0x10   : > { %v394_v8 = vpack.c.bf16 %v391_v7, %v391_v7  ;;  %v392_v32 = vld [vmem:[%s384_s20] sm:$0xff] }
  0x11   : > { %1271 = vmatpush3.bf16.msra.mxu0 %v1366_v3 }
  0x12   : > { %1279 = vmatpush3.bf16.msra.mxu1 %v1367_v4  ;;  %1284 = vmatprep.subr.bf16.mxu0 %v1398_v1 }
  0x13   : > { %1292 = vmatprep.subr.bf16.mxu1 %v1398_v1 }
  0x14   : > { %1273 = vmatmul.mubr.msk.bf16.vlgmr.msra.gmra.mxu0 %vm411_vm1, %v393_v6 }
  0x15   : > { %1281 = vmatmul.mubr.msk.bf16.vlgmr.msra.gmra.mxu1 %vm411_vm1, %v394_v8  ;;  %1288 = vmatprep.mubr.msk.bf16.mxu0 %vm1399_vm0, %v1398_v1 }
  0x16   : > { %1294 = vmatprep.mubr.msk.bf16.mxu1 %vm1399_vm0, %v1398_v1  ;;  %1285 = vmatpush3.bf16.msra.mxu0 %v1368_v21 }
  0x17   : > { %1286 = vmatprep.subr.bf16.mxu0 %v1398_v1 }
  0x1a   : > { %1287 = vmatpush3.bf16.msra.mxu0 %v1369_v22 }
  0x1b   : > { %1298 = vmatprep.subr.bf16.mxu0 %v1398_v1 }
  0x1d   : > { %1289 = vmatmul.mubr.msk.bf16.vlgmr.msra.gmra.mxu0 %vm411_vm1, %v394_v8 }
  0x1e   : > { %1300 = vmatprep.mubr.msk.bf16.mxu0 %vm1399_vm0, %v1398_v1 }
  0xd4   : > { %v449_v9 = vpop.f32.mrf.mxu0 }
  0xd5   : > { %v455_v10 = vmul.f32 0.17677669, %v449_v9  ;;  %v509_v11 = vpop.f32.mrf.mxu1 }
  0xd6   : > { %v572_v12 = vpack.c.bf16 %v509_v11, %v509_v11  ;;  %v1274_v13 = vpop.f32.mrf.mxu0 }
  0xd7   : > { %v1282_v14 = vpop.f32.mrf.mxu1  ;;  %v571_v15 = vpack.c.bf16 %v455_v10, %v455_v10 }
  0xd8   : > { %795 = vrot.lane.b32.xlu1 %v572_v12, %s1400_s30  ;;  %684 = vrot.lane.b32.xlu0 %v572_v12, %s1401_s11  ;;  %v452_v16 = vpop.f32.mrf.mxu0  ;;  %v578_v17 = vsel %vm573_vm2, %v572_v12, 0 }
  0xd9   : > { %v512_v18 = vpop.f32.mrf.mxu1  ;;  %1293 = vmatpush3.bf16.xpose.msra.mxu1 %v578_v17 }
  0xda   : > { %v1275_v19 = vpop.f32.mrf.mxu0  ;;  %1304 = vmatprep.subr.bf16.mxu1 %v1398_v1 }
  0xdb   : > { %v1283_v20 = vpop.f32.mrf.mxu1 }
  0xdc   : > { %793 = vrot.lane.b32.xlu1 %v571_v15, %s1400_s30  ;;  %681 = vrot.lane.b32.xlu0 %v571_v15, %s1401_s11 }
  0xdd   : > { %v565_v39 = vpop.f32.mrf.mxu0 }
  0xde   : > { %v632_v40 = vpack.c.bf16 %v565_v39, %v565_v39 }
  0xdf   : > { %v1290_v41 = vpop.f32.mrf.mxu0 }
  0xe0   : > { %903 = vrot.lane.b32.xlu1 %v571_v15, %s1402_s12  ;;  %905 = vrot.lane.b32.xlu0 %v572_v12, %s1402_s12  ;;  %v638_v42 = vsel %vm636_vm3, %v632_v40, 0 }
  0xe1   : > { %1295 = vmatmul.mubr.msk.bf16.vlgmr.msra.gmra.mxu1 %vm573_vm2, %v571_v15  ;;  %v568_v43 = vpop.f32.mrf.mxu0  ;;  %1299 = vmatpush3.bf16.msra.mxu0 %v638_v42 }
  0xe2   : > { %1306 = vmatprep.mubr.msk.bf16.mxu1 %vm1399_vm0, %v1398_v1  ;;  %1310 = vmatprep.subr.bf16.mxu0 %v1398_v1 }
  0xe3   : > { %v1291_v44 = vpop.f32.mrf.mxu0 }
 0x14a   : > { %v685_v23 = vpop.permute.xlu0 %684  ;;  %v796_v25 = vpop.permute.xlu1 %795 }
 0x14b   : > { %v690_v24 = vsel %vm573_vm2, %v685_v23, 0  ;;  %v801_v27 = vsel %vm573_vm2, %v796_v25, 0 }
 0x14c   : > { %1305 = vmatpush3.bf16.xpose.msra.mxu1 %v690_v24 }
 0x14d   : > { %1316 = vmatprep.subr.bf16.mxu1 %v1398_v1 }
 0x14e   : > { %v682_v26 = vpop.permute.xlu0 %681  ;;  %v794_v29 = vpop.permute.xlu1 %793 }
 0x152   : > { %v906_v28 = vpop.permute.xlu0 %905  ;;  %v904_v31 = vpop.permute.xlu1 %903 }
 0x153   : > { %1307 = vmatmul.mubr.msk.bf16.vlgmr.msra.gmra.mxu1 %vm573_vm2, %v682_v26  ;;  %v911_v30 = vsel %vm573_vm2, %v906_v28, 0 }
 0x154   : > { %1317 = vmatpush3.bf16.xpose.msra.mxu1 %v801_v27  ;;  %1318 = vmatprep.mubr.msk.bf16.mxu1 %vm1399_vm0, %v1398_v1 }
 0x155   : > { %1328 = vmatprep.subr.bf16.mxu1 %v1398_v1 }
 0x15b   : > { %1319 = vmatmul.mubr.msk.bf16.vlgmr.msra.gmra.mxu1 %vm573_vm2, %v794_v29 }
 0x15c   : > { %1329 = vmatpush3.bf16.xpose.msra.mxu1 %v911_v30  ;;  %1330 = vmatprep.mubr.msk.bf16.mxu1 %vm1399_vm0, %v1398_v1 }
 0x15d   : > { %1340 = vmatprep.subr.bf16.mxu1 %v1398_v1 }
 0x163   : > { %1331 = vmatmul.mubr.msk.bf16.vlgmr.msra.gmra.mxu1 %vm573_vm2, %v904_v31 }
 0x164   : > { %1344 = vmatprep.mubr.msk.bf16.mxu1 %vm1399_vm0, %v1398_v1 }
 0x1a1   : > { %v614_v33 = vpop.f32.mrf.mxu1 }
 0x1a2   : > { %v615_v34 = vadd.f32 %v614_v33, %v392_v32 }
 0x1a3   : > { %v1296_v35 = vpop.f32.mrf.mxu1 }
 0x1a4   : > { %v620_v36 = vsel %vm573_vm2, %v615_v34, -inf }
 0x1a5   : > { %621 = vmax.xlane.f32.xlu0 %v620_v36  ;;  %v617_v37 = vpop.f32.mrf.mxu1 }
 0x1a7   : > { %v1297_v38 = vpop.f32.mrf.mxu1 }
 0x213   : > { %v726_v45 = vpop.f32.mrf.mxu1 }
 0x214   : > { %v727_v46 = vadd.f32 %v726_v45, %v392_v32 }
 0x215   : > { %v1308_v47 = vpop.f32.mrf.mxu1 }
 0x216   : > { %v732_v48 = vsel %vm573_vm2, %v727_v46, -inf  ;;  %v1370_v47 = vld [vmem:[%s1615_s6 + $0x8] sm:$0xff]  }
 0x217   : > { %733 = vmax.xlane.f32.xlu1 %v732_v48  ;;  %v729_v49 = vpop.f32.mrf.mxu1  ;;  %1341 = vmatpush3.bf16.msra.mxu1 %v1370_v47 }
 0x218   : > { %1342 = vmatprep.subr.bf16.mxu1 %v1398_v1 }
 0x219   : > { %v1309_v50 = vpop.f32.mrf.mxu1 }
 0x21a   : > { %v1371_v50 = vld [vmem:[%s1615_s6] sm:$0xff]  }
 0x21b   : > { %v837_v51 = vpop.f32.mrf.mxu1  ;;  %1343 = vmatpush3.bf16.msra.mxu1 %v1371_v50 }
 0x21c   : > { %v838_v52 = vadd.f32 %v837_v51, %v392_v32 }
 0x21d   : > { %v1320_v53 = vpop.f32.mrf.mxu1 }
 0x21e   : > { %v843_v54 = vsel %vm573_vm2, %v838_v52, -inf }
 0x21f   : > { %844 = vmax.xlane.f32.xlu0 %v843_v54  ;;  %v840_v55 = vpop.f32.mrf.mxu1 }
 0x221   : > { %v1321_v56 = vpop.f32.mrf.mxu1 }
 0x223   : > { %v947_v57 = vpop.f32.mrf.mxu1 }
 0x224   : > { %v948_v58 = vadd.f32 %v947_v57, %v392_v32 }
 0x225   : > { %v1332_v59 = vpop.f32.mrf.mxu1 }
 0x226   : > { %v953_v60 = vsel %vm573_vm2, %v948_v58, -inf }
 0x227   : > { %954 = vmax.xlane.f32.xlu0 %v953_v60  ;;  %v950_v61 = vpop.f32.mrf.mxu1 }
 0x229   : > { %v1333_v62 = vpop.f32.mrf.mxu1 }
 0x22e   : > { %v622_v63 = vpop.xlane.xlu0 %621 }
 0x22f   : > { %v623_v0 = vsub.f32 %v615_v34, %v622_v63 }
 0x231   : > { %v624_v2 = vmul.f32 1.442695, %v623_v0 }
 0x233   : > { %1372 = vpow2.f32 %v624_v2 }
 0x240   : > { %v1373_v3 = vpop.eup %1372 }
 0x241   : > { %v626_v4 = vsel %vm573_vm2, %v1373_v3, 0.0 }
 0x242   : > { %627 = vadd.xlane.f32.xlu1 %v626_v4  ;;  %v1232_v4 = vld [vmem:[%s1616_s7] ss:$0 sm:$0xff] }
 0x253   : > { %745 = vrot.lane.b32.xlu1 %v632_v40, %s1401_s11 }
 0x2a0   : > { %v734_v6 = vpop.xlane.xlu1 %733 }
 0x2a1   : > { %v735_v7 = vsub.f32 %v727_v46, %v734_v6 }
 0x2a3   : > { %v736_v8 = vmul.f32 1.442695, %v735_v7 }
 0x2a5   : > { %1374 = vpow2.f32 %v736_v8 }
 0x2a8   : > { %v845_v9 = vpop.xlane.xlu0 %844 }
 0x2a9   : > { %v846_v10 = vsub.f32 %v838_v52, %v845_v9 }
 0x2ab   : > { %v847_v11 = vmul.f32 1.442695, %v846_v10 }
 0x2ad   : > { %1376 = vpow2.f32 %v847_v11 }
 0x2b0   : > { %v955_v12 = vpop.xlane.xlu0 %954 }
 0x2b1   : > { %v956_v13 = vsub.f32 %v948_v58, %v955_v12 }
 0x2b2   : > { %v1375_v14 = vpop.eup %1374 }
 0x2b3   : > { %v957_v15 = vmul.f32 1.442695, %v956_v13  ;;  %v738_v16 = vsel %vm573_vm2, %v1375_v14, 0.0 }
 0x2b4   : > { %739 = vadd.xlane.f32.xlu0 %v738_v16 }
 0x2b5   : > { %1378 = vpow2.f32 %v957_v15 }
 0x2ba   : > { %v1377_v17 = vpop.eup %1376 }
 0x2bb   : > { %v849_v18 = vsel %vm573_vm2, %v1377_v17, 0.0 }
 0x2bc   : > { %850 = vadd.xlane.f32.xlu1 %v849_v18 }
 0x2c2   : > { %v1379_v19 = vpop.eup %1378 }
 0x2c3   : > { %v959_v20 = vsel %vm573_vm2, %v1379_v19, 0.0 }
 0x2c4   : > { %960 = vadd.xlane.f32.xlu0 %v959_v20 }
 0x2cb   : > { %v628_v21 = vpop.xlane.xlu1 %627 }
 0x2cc   : > { %1380 = vrcp.f32 %v628_v21 }
 0x2cd   : > { %965 = vrot.lane.b32.xlu1 %v632_v40, %s1402_s12 }
 0x2cf   : > { %v746_v23 = vpop.permute.xlu1 %745 }
 0x2d0   : > { %v751_v26 = vsel %vm636_vm3, %v746_v23, 0  ;;  %v1237_v23 = vld [vmem:[%s1618_s9] ss:$0 sm:$0xff] }
 0x2d9   : > { %v1381_v22 = vpop.eup %1380 }
 0x2da   : > { %855 = vrot.lane.b32.xlu0 %v632_v40, %s1400_s30  ;;  %v630_v24 = vmul.f32 %v1381_v22, %v1373_v3 }
 0x2dc   : > { %v631_v25 = vpack.c.bf16 %v630_v24, %v630_v24 }
 0x2de   : > { %1301 = vmatmul.mubr.msk.bf16.vlgmr.msra.gmra.mxu0 %vm573_vm2, %v631_v25 }
 0x2df   : > { %1311 = vmatpush3.bf16.msra.mxu0 %v751_v26  ;;  %1312 = vmatprep.mubr.msk.bf16.mxu0 %vm1399_vm0, %v1398_v1 }
 0x2e0   : > { %1322 = vmatprep.subr.bf16.mxu0 %v1398_v1 }
 0x33d   : > { %v740_v27 = vpop.xlane.xlu0 %739 }
 0x33e   : > { %1382 = vrcp.f32 %v740_v27 }
 0x345   : > { %v851_v28 = vpop.xlane.xlu1 %850 }
 0x346   : > { %1384 = vrcp.f32 %v851_v28 }
 0x349   : > { %v966_v37 = vpop.permute.xlu1 %965 }
 0x34a   : > { %v971_v39 = vsel %vm636_vm3, %v966_v37, 0 }
 0x34b   : > { %v1383_v29 = vpop.eup %1382 }
 0x34c   : > { %v742_v30 = vmul.f32 %v1383_v29, %v1375_v14 }
 0x34d   : > { %v961_v31 = vpop.xlane.xlu0 %960 }
 0x34e   : > { %1386 = vrcp.f32 %v961_v31  ;;  %v743_v32 = vpack.c.bf16 %v742_v30, %v742_v30 }
 0x350   : > { %1313 = vmatmul.mubr.msk.bf16.vlgmr.msra.gmra.mxu0 %vm573_vm2, %v743_v32 }
 0x351   : > { %v856_v33 = vpop.permute.xlu0 %855  ;;  %1324 = vmatprep.mubr.msk.bf16.mxu0 %vm1399_vm0, %v1398_v1 }
 0x352   : > { %v861_v34 = vsel %vm636_vm3, %v856_v33, 0 }
 0x353   : > { %v1385_v35 = vpop.eup %1384  ;;  %1323 = vmatpush3.bf16.msra.mxu0 %v861_v34 }
 0x354   : > { %1334 = vmatprep.subr.bf16.mxu0 %v1398_v1  ;;  %v853_v36 = vmul.f32 %v1385_v35, %v1377_v17 }
 0x356   : > { %v854_v38 = vpack.c.bf16 %v853_v36, %v853_v36 }
 0x358   : > { %1325 = vmatmul.mubr.msk.bf16.vlgmr.msra.gmra.mxu0 %vm573_vm2, %v854_v38 }
 0x359   : > { %1335 = vmatpush3.bf16.msra.mxu0 %v971_v39  ;;  %1336 = vmatprep.mubr.msk.bf16.mxu0 %vm1399_vm0, %v1398_v1 }
 0x35b   : > { %v1387_v40 = vpop.eup %1386 }
 0x35c   : > { %v963_v41 = vmul.f32 %v1387_v40, %v1379_v19 }
 0x35e   : > { %v964_v42 = vpack.c.bf16 %v963_v41, %v963_v41 }
 0x360   : > { %1337 = vmatmul.mubr.msk.bf16.vlgmr.msra.gmra.mxu0 %vm573_vm2, %v964_v42 }
 0x39e   : > { %v674_v43 = vpop.f32.mrf.mxu0 }
 0x3a0   : > { %v1302_v44 = vpop.f32.mrf.mxu0 }
 0x3a2   : > { %v677_v45 = vpop.f32.mrf.mxu0 }
 0x3a4   : > { %v1303_v46 = vpop.f32.mrf.mxu0 }
 0x410   : > { %v787_v48 = vpop.f32.mrf.mxu0 }
 0x411   : > { %1014 = vrot.lane.b32.xlu1 %v787_v48, %s1403_s24 }
 0x412   : > { %v1314_v49 = vpop.f32.mrf.mxu0 }
 0x414   : > { %v790_v51 = vpop.f32.mrf.mxu0 }
 0x416   : > { %v1315_v52 = vpop.f32.mrf.mxu0 }
 0x418   : > { %v897_v53 = vpop.f32.mrf.mxu0 }
 0x419   : > { %1018 = vrot.lane.b32.xlu0 %v897_v53, %s1404_s27 }
 0x41a   : > { %v1326_v54 = vpop.f32.mrf.mxu0 }
 0x41c   : > { %v900_v55 = vpop.f32.mrf.mxu0 }
 0x41e   : > { %v1327_v56 = vpop.f32.mrf.mxu0 }
 0x420   : > { %v1007_v57 = vpop.f32.mrf.mxu0 }
 0x421   : > { %1022 = vrot.lane.b32.xlu1 %v1007_v57, %s1405_s28 }
 0x422   : > { %v1338_v1 = vpop.f32.mrf.mxu0 }
 0x424   : > { %v1010_v58 = vpop.f32.mrf.mxu0 }
 0x426   : > { %v1339_v59 = vpop.f32.mrf.mxu0 }
 0x483   : > { %v1015_v60 = vpop.permute.xlu1 %1014 }
 0x484   : > { %v1025_v62 = vsel %vm573_vm2, %v674_v43, %v1015_v60 }
 0x48b   : > { %v1019_v61 = vpop.permute.xlu0 %1018 }
 0x48c   : > { %v1027_v63 = vsel %vm1026_vm4, %v1025_v62, %v1019_v61 }
 0x493   : > { %v1023_v0 = vpop.permute.xlu1 %1022 }
 0x494   : > { %v1029_v2 = vsel %vm1028_vm5, %v1027_v63, %v1023_v0 }
 0x495   : > { %v1030_v3 = vpack.c.bf16 %v1029_v2, %v1029_v2 }
 0x497   : > { %1345 = vmatmul.mubr.msk.bf16.vlgmr.msra.gmra.mxu1 %vm411_vm1, %v1030_v3 }
 0x557   : > { %v1091_v6 = vpop.f32.mrf.mxu1 }
 0x558   : > { %v1092_v7 = vadd.f32 %v1232_v4, %v1091_v6 }
 0x559   : > { %v1346_v8 = vpop.f32.mrf.mxu1 }
 0x55a   : > { %v1097_v9 = vadd.f32 %v1092_v7, %v1496_v5  ;;  %v1236_v5 = vld [vmem:[%s1617_s8] ss:$0 sm:$0xff] }
 0x55b   : > { %v1094_v10 = vpop.f32.mrf.mxu1 }
 0x55c   : > { %v1098_v11 = vsel %vm411_vm1, %v1097_v9, 0.0 }
 0x55d   : > { %1099 = vadd.xlane.f32.xlu0 %v1098_v11  ;;  %v1347_v12 = vpop.f32.mrf.mxu1 }
 0x5e6   : > { %v1100_v13 = vpop.xlane.xlu0 %1099 }
 0x5e7   : > { %v1102_v14 = vmul.f32 0.03125, %v1100_v13 }
 0x5e9   : > { %v1103_v15 = vsub.f32 %v1097_v9, %v1102_v14 }
 0x5eb   : > { %v1104_v16 = vmul.f32 %v1103_v15, %v1103_v15 }
 0x5ed   : > { %v1105_v17 = vsel %vm411_vm1, %v1104_v16, 0.0 }
 0x5ee   : > { %1106 = vadd.xlane.f32.xlu1 %v1105_v17 }
 0x677   : > { %v1107_v18 = vpop.xlane.xlu1 %1106 }
 0x678   : > { %v1108_v19 = vmul.f32 0.03125, %v1107_v18 }
 0x67a   : > { %v1109_v20 = vadd.f32 1e-05, %v1108_v19 }
 0x67c   : > { %1388 = vrsqrt.f32 %v1109_v20 }
 0x689   : > { %v1389_v21 = vpop.eup %1388 }
 0x68a   : > { %v1111_v22 = vmul.f32 %v1389_v21, %v1103_v15 }
 0x68c   : > { %v1119_v24 = vmul.f32 %v1236_v5, %v1111_v22 }
 0x68e   : > { %v1127_v25 = vadd.f32 %v1237_v23, %v1119_v24 }
 0x690   : > { %1128 = vst.msk [vmem:[%s388_s18] sm:$0xff] %vm411_vm1, %v1127_v25 }
 0x691 PF: > { %s20_s13 = sadd.s32 1, %s1396_s13  }
 0x692   : > { %p17_p4 = scmp.ge.s32.totalorder %s20_s13, 4  }
 0x694   :  { %19 = sbr.rel (!%p17_p4) target bundleno = 1 (0x1), region = 96 }

</bundles_post_ra>
